<compile_context>
chip_gen: v6e
topology: v6e:2x2x1
jax: 0.10.0
libtpu: 0.0.40
codegen_flags: <defaults>
</compile_context>

<pallas_src>
import jax
import jax.numpy as jnp
from jax.experimental import pallas as pl
from jax.experimental.pallas import tpu as pltpu

EPS = 1e-5          # nn.BatchNorm2d default
LANE = 128
TM_MAX = 2048       # cap on the M tile (lane dim of the kernel output)


def _round_up(x, m):
    return (x + m - 1) // m * m


def _vmem_capacity_bytes():
    try:
        return int(pltpu.get_tpu_info().vmem_capacity_bytes)
    except Exception:                       # conservative fallback (v7x per-core VMEM)
        return 64 * 1024 * 1024


def _pick_tm(m, k_pad, c_pad, in_bytes, out_bytes, max_tm):
    """Largest M-tile (multiple of 128) whose double-buffered working set fits."""
    cap = _vmem_capacity_bytes()
    budget = cap // 2                       # leave headroom for compiler scratch/spills

    def need(tm):
        return (2 * k_pad * tm * in_bytes           # patch tile, double buffered
                + 2 * c_pad * tm * out_bytes        # output tile, double buffered
                + 2 * c_pad * k_pad * in_bytes      # weight block
                + 6 * c_pad * LANE * 4)             # gamma/beta/scratch (lane-padded)

    m_ceil = _round_up(max(m, 1), LANE)
    cap_tm = max(LANE, min(m_ceil, max_tm))
    tm = LANE
    while tm + LANE <= cap_tm and need(tm + LANE) <= budget:
        tm += LANE
    vmem_limit = int(min(0.9 * cap, need(tm) + (16 << 20)))
    return tm, vmem_limit


def conv_block_forward(x, weight, bias, gamma, beta, *, stride=2,
                       out_dtype=jnp.bfloat16, max_tm=None):
    """x: (N, C_in, H, W) NCHW, weight: (C_out, C_in, KH, KW) OIHW -> NCHW output.

    `bias` is accepted for interface parity but is mathematically cancelled by
    train-mode BatchNorm, so the kernel never reads it.
    """
    del bias  # (y + b) - mean(y + b) == y - mean(y): exact cancellation under BN

    N, C_in, H, W = x.shape
    C_out, _, KH, KW = weight.shape
    OH = (H - KH) // stride + 1
    OW = (W - KW) // stride + 1
    M = N * OH * OW
    K = C_in * KH * KW

    c_pad = _round_up(C_out, 8)             # sublane multiple for the channel dim
    k_pad = _round_up(K, 16)                # bf16 sublane-pack multiple (K stays un-tiled)
    max_tm = TM_MAX if max_tm is None else max_tm
    in_bytes, out_bytes = 2, jnp.dtype(out_dtype).itemsize
    tm, vmem_limit = _pick_tm(M, k_pad, c_pad, in_bytes, out_bytes, max_tm)
    m_pad = _round_up(M, tm)
    n_mt = m_pad // tm

    # ---- glue: bf16 im2col, transposed to the lane-dense (K, M) layout ----
    xb = x.astype(jnp.bfloat16)
    cols = []
    for kh in range(KH):
        for kw in range(KW):
            cols.append(xb[:, :, kh:kh + stride * OH:stride,
                              kw:kw + stride * OW:stride])
    patches = jnp.stack(cols, axis=2)                    # (N, C_in, KH*KW, OH, OW)
    patches = patches.reshape(N, K, OH, OW)              # K index = c*16 + kh*4 + kw
    p_t = patches.transpose(1, 0, 2, 3).reshape(K, M)    # (K, M), M = (n, oh, ow)
    p_t = jnp.pad(p_t, ((0, k_pad - K), (0, m_pad - M)))

    w_mat = weight.astype(jnp.bfloat16).reshape(C_out, K)
    w_mat = jnp.pad(w_mat, ((0, c_pad - C_out), (0, k_pad - K)))
    g_mat = jnp.pad(gamma.astype(jnp.float32), (0, c_pad - C_out)).reshape(c_pad, 1)
    b_mat = jnp.pad(beta.astype(jnp.float32), (0, c_pad - C_out)).reshape(c_pad, 1)

    inv_m = 1.0 / float(M)                  # true count: padded columns are exact zeros

    def kernel(p_ref, w_ref, g_ref, beta_ref, o_ref, sum_ref, sq_ref):
        p = pl.program_id(0)                # 0: stats pass, 1: normalize pass
        i = pl.program_id(1)                # M tile index

        # Conv tile on the MXU: (c_pad, k_pad) @ (k_pad, tm) -> (c_pad, tm), f32 acc.
        y = jnp.dot(w_ref[...], p_ref[...], preferred_element_type=jnp.float32)

        @pl.when((p == 0) & (i == 0))
        def _init():
            sum_ref[...] = jnp.zeros_like(sum_ref)
            sq_ref[...] = jnp.zeros_like(sq_ref)

        @pl.when(p == 0)
        def _stats():
            sum_ref[...] += jnp.sum(y, axis=1, keepdims=True)
            sq_ref[...] += jnp.sum(y * y, axis=1, keepdims=True)
            o_ref[...] = y.astype(o_ref.dtype)   # deterministic filler; overwritten

        @pl.when((p == 1) & (i == 0))
        def _finalize_stats():
            mean = sum_ref[...] * inv_m
            var = jnp.maximum(sq_ref[...] * inv_m - mean * mean, 0.0)
            rstd = jax.lax.rsqrt(var + EPS)
            scale = g_ref[...] * rstd
            sum_ref[...] = scale                            # scratch now holds scale
            sq_ref[...] = beta_ref[...] - mean * scale      # scratch now holds shift

        @pl.when(p == 1)
        def _normalize():
            o_ref[...] = jnp.maximum(y * sum_ref[...] + sq_ref[...],
                                     0.0).astype(o_ref.dtype)

    out = pl.pallas_call(
        kernel,
        out_shape=jax.ShapeDtypeStruct((c_pad, m_pad), out_dtype),
        grid=(2, n_mt),
        in_specs=[
            pl.BlockSpec((k_pad, tm), lambda p, i: (0, i)),      # patch tile (streamed)
            pl.BlockSpec((c_pad, k_pad), lambda p, i: (0, 0)),   # weights (resident)
            pl.BlockSpec((c_pad, 1), lambda p, i: (0, 0)),       # gamma
            pl.BlockSpec((c_pad, 1), lambda p, i: (0, 0)),       # beta
        ],
        out_specs=pl.BlockSpec((c_pad, tm), lambda p, i: (0, i)),
        scratch_shapes=[pltpu.VMEM((c_pad, 1), jnp.float32),     # sum  -> scale
                        pltpu.VMEM((c_pad, 1), jnp.float32)],    # sumsq -> shift
        compiler_params=pltpu.CompilerParams(
            # both axes carry VMEM state (streaming BN stats) -> sequential.
            dimension_semantics=("arbitrary", "arbitrary"),
            vmem_limit_bytes=vmem_limit),
    )(p_t, w_mat, g_mat, b_mat)

    # back to NCHW; the transpose runs on the narrow kernel dtype (bf16 by default)
    out = out[:C_out, :M].reshape(C_out, N, OH, OW).transpose(1, 0, 2, 3)
    return out


def _reference(x, weight, bias, gamma, beta, *, stride=2):
    # Same bf16-input / f32-accumulation conv precision as the kernel; f32 BN.
    y = jax.lax.conv_general_dilated(
        x.astype(jnp.bfloat16), weight.astype(jnp.bfloat16),
        window_strides=(stride, stride), padding="VALID",
        dimension_numbers=("NCHW", "OIHW", "NCHW"),
        preferred_element_type=jnp.float32)
    y = y + bias.reshape(1, -1, 1, 1)      # kernel drops this; BN cancels it exactly
    mean = y.mean(axis=(0, 2, 3), keepdims=True)
    var = ((y - mean) ** 2).mean(axis=(0, 2, 3), keepdims=True)
    y = (y - mean) * jax.lax.rsqrt(var + EPS)
    y = y * gamma.reshape(1, -1, 1, 1) + beta.reshape(1, -1, 1, 1)
    return jnp.maximum(y, 0.0)


def _run_case(key, N, C_in, C_out, H, W, out_dtype, max_tm, tol):
    KH = KW = 4
    kx, kw_, kb, kg, kbt = jax.random.split(key, 5)
    x = jax.random.normal(kx, (N, C_in, H, W), jnp.float32)
    fan_in = C_in * KH * KW
    bound = 1.0 / float(fan_in) ** 0.5
    weight = jax.random.uniform(kw_, (C_out, C_in, KH, KW), jnp.float32, -bound, bound)
    bias = jax.random.uniform(kb, (C_out,), jnp.float32, -bound, bound)
    gamma = 1.0 + 0.2 * jax.random.normal(kg, (C_out,), jnp.float32)
    beta = 0.1 * jax.random.normal(kbt, (C_out,), jnp.float32)

    out = conv_block_forward(x, weight, bias, gamma, beta,
                             out_dtype=out_dtype, max_tm=max_tm)
    out = jax.block_until_ready(out)

    OH = (H - KH) // 2 + 1
    OW = (W - KW) // 2 + 1
    assert out.shape == (N, C_out, OH, OW)
    assert out.dtype == out_dtype

    ref = _reference(x, weight, bias, gamma, beta)
    out_f32 = out.astype(jnp.float32)
    ok = bool(jnp.allclose(out_f32, ref, atol=tol, rtol=tol))
    max_err = float(jnp.max(jnp.abs(out_f32 - ref)))
    assert ok, f"mismatch vs reference (max abs diff = {max_err:.3e})"


if __name__ == "__main__":
    key = jax.random.PRNGKey(0)
    k1, k2 = jax.random.split(key)

    # Case 1: the module's nominal small shape (bf16 output, auto tile size).
    _run_case(k1, N=2, C_in=4, C_out=8, H=16, W=16,
              out_dtype=jnp.bfloat16, max_tm=None, tol=3e-2)

    # Case 2: exercises multi-tile streaming BN (forced tm=128 -> 3 M-tiles),
    # channel padding (C_out=10 -> 16) and f32 output.
    _run_case(k2, N=4, C_in=6, C_out=10, H=20, W=20,
              out_dtype=jnp.float32, max_tm=128, tol=2e-3)

    print("KERNEL_OK")
</pallas_src>

<mosaic_0001>
module attributes {stable_mosaic.version = 11 : i64} {
  func.func @kernel(%arg0: i32, %arg1: i32, %arg2: memref<64x128xbf16, #tpu.memory_space<vmem>>, %arg3: memref<8x64xbf16, #tpu.memory_space<vmem>>, %arg4: memref<8x1xf32, #tpu.memory_space<vmem>>, %arg5: memref<8x1xf32, #tpu.memory_space<vmem>>, %arg6: memref<8x128xbf16, #tpu.memory_space<vmem>>, %arg7: memref<8x1xf32, #tpu.memory_space<vmem>>, %arg8: memref<8x1xf32, #tpu.memory_space<vmem>>) attributes {dimension_semantics = [#tpu.dimension_semantics<arbitrary>, #tpu.dimension_semantics<arbitrary>], iteration_bounds = array<i64: 2, 1>, scalar_prefetch = 0 : i64, scratch_operands = 2 : i64, tpu.core_type = #tpu.core_type<tc>, window_params = [{transform_indices = @transform_0, window_bounds = array<i64: 64, 128>}, {pipeline_mode = #tpu.pipeline_mode<synchronous>, transform_indices = @transform_1, window_bounds = array<i64: 8, 64>}, {pipeline_mode = #tpu.pipeline_mode<synchronous>, transform_indices = @transform_2, window_bounds = array<i64: 8, 1>}, {pipeline_mode = #tpu.pipeline_mode<synchronous>, transform_indices = @transform_3, window_bounds = array<i64: 8, 1>}, {transform_indices = @transform_4, window_bounds = array<i64: 8, 128>}]} {
    %c0 = arith.constant 0 : index
    %c0_0 = arith.constant 0 : index
    %0 = vector.load %arg3[%c0, %c0_0] : memref<8x64xbf16, #tpu.memory_space<vmem>>, vector<8x64xbf16>
    %c0_1 = arith.constant 0 : index
    %c0_2 = arith.constant 0 : index
    %1 = vector.load %arg2[%c0_1, %c0_2] : memref<64x128xbf16, #tpu.memory_space<vmem>>, vector<64x128xbf16>
    %cst = arith.constant dense<0.000000e+00> : vector<8x128xf32>
    %2 = tpu.matmul %0, %1, %cst {dimension_numbers = #tpu.dot_dimension_numbers<[1], [0], [0], [1], [0, 0, 1, 1], [], []>} : vector<8x64xbf16>, vector<64x128xbf16>, vector<8x128xf32> -> vector<8x128xf32>
    %c0_i32 = arith.constant 0 : i32
    %3 = arith.cmpi eq, %arg0, %c0_i32 : i32
    %c0_i32_3 = arith.constant 0 : i32
    %4 = arith.cmpi eq, %arg1, %c0_i32_3 : i32
    %5 = arith.andi %3, %4 : i1
    %6 = arith.extui %5 : i1 to i32
    %c0_i32_4 = arith.constant 0 : i32
    %7 = arith.cmpi ne, %6, %c0_i32_4 : i32
    scf.if %7 {
      %cst_11 = arith.constant 0.000000e+00 : f32
      %19 = vector.broadcast %cst_11 : f32 to vector<8x1xf32>
      %c0_12 = arith.constant 0 : index
      %c0_13 = arith.constant 0 : index
      %20 = vector.load %arg7[%c0_12, %c0_13] : memref<8x1xf32, #tpu.memory_space<vmem>>, vector<8x1xf32>
      tpu.vector_store %arg7[%c0_12, %c0_13], %19 {strides = array<i32>} : memref<8x1xf32, #tpu.memory_space<vmem>>, vector<8x1xf32>,
      %cst_14 = arith.constant 0.000000e+00 : f32
      %21 = vector.broadcast %cst_14 : f32 to vector<8x1xf32>
      %c0_15 = arith.constant 0 : index
      %c0_16 = arith.constant 0 : index
      %22 = vector.load %arg8[%c0_15, %c0_16] : memref<8x1xf32, #tpu.memory_space<vmem>>, vector<8x1xf32>
      tpu.vector_store %arg8[%c0_15, %c0_16], %21 {strides = array<i32>} : memref<8x1xf32, #tpu.memory_space<vmem>>, vector<8x1xf32>,
    } else {
    }
    %c0_i32_5 = arith.constant 0 : i32
    %8 = arith.cmpi eq, %arg0, %c0_i32_5 : i32
    %9 = arith.extui %8 : i1 to i32
    %c0_i32_6 = arith.constant 0 : i32
    %10 = arith.cmpi ne, %9, %c0_i32_6 : i32
    scf.if %10 {
      %c0_11 = arith.constant 0 : index
      %c0_12 = arith.constant 0 : index
      %19 = vector.load %arg7[%c0_11, %c0_12] : memref<8x1xf32, #tpu.memory_space<vmem>>, vector<8x1xf32>
      %cst_13 = arith.constant dense<0.000000e+00> : vector<8xf32>
      %20 = vector.multi_reduction <add>, %2, %cst_13 [1] : vector<8x128xf32> to vector<8xf32>
      %21 = vector.shape_cast %20 : vector<8xf32> to vector<8x1xf32>
      %22 = arith.addf %19, %21 : vector<8x1xf32>
      %c0_14 = arith.constant 0 : index
      %c0_15 = arith.constant 0 : index
      %23 = vector.load %arg7[%c0_14, %c0_15] : memref<8x1xf32, #tpu.memory_space<vmem>>, vector<8x1xf32>
      tpu.vector_store %arg7[%c0_14, %c0_15], %22 {strides = array<i32>} : memref<8x1xf32, #tpu.memory_space<vmem>>, vector<8x1xf32>,
      %c0_16 = arith.constant 0 : index
      %c0_17 = arith.constant 0 : index
      %24 = vector.load %arg8[%c0_16, %c0_17] : memref<8x1xf32, #tpu.memory_space<vmem>>, vector<8x1xf32>
      %25 = arith.mulf %2, %2 : vector<8x128xf32>
      %cst_18 = arith.constant dense<0.000000e+00> : vector<8xf32>
      %26 = vector.multi_reduction <add>, %25, %cst_18 [1] : vector<8x128xf32> to vector<8xf32>
      %27 = vector.shape_cast %26 : vector<8xf32> to vector<8x1xf32>
      %28 = arith.addf %24, %27 : vector<8x1xf32>
      %c0_19 = arith.constant 0 : index
      %c0_20 = arith.constant 0 : index
      %29 = vector.load %arg8[%c0_19, %c0_20] : memref<8x1xf32, #tpu.memory_space<vmem>>, vector<8x1xf32>
      tpu.vector_store %arg8[%c0_19, %c0_20], %28 {strides = array<i32>} : memref<8x1xf32, #tpu.memory_space<vmem>>, vector<8x1xf32>,
      %30 = arith.truncf %2 : vector<8x128xf32> to vector<8x128xbf16>
      %c0_21 = arith.constant 0 : index
      %c0_22 = arith.constant 0 : index
      %31 = vector.load %arg6[%c0_21, %c0_22] : memref<8x128xbf16, #tpu.memory_space<vmem>>, vector<8x128xbf16>
      tpu.vector_store %arg6[%c0_21, %c0_22], %30 {strides = array<i32>} : memref<8x128xbf16, #tpu.memory_space<vmem>>, vector<8x128xbf16>,
    } else {
    }
    %c1_i32 = arith.constant 1 : i32
    %11 = arith.cmpi eq, %arg0, %c1_i32 : i32
    %c0_i32_7 = arith.constant 0 : i32
    %12 = arith.cmpi eq, %arg1, %c0_i32_7 : i32
    %13 = arith.andi %11, %12 : i1
    %14 = arith.extui %13 : i1 to i32
    %c0_i32_8 = arith.constant 0 : i32
    %15 = arith.cmpi ne, %14, %c0_i32_8 : i32
    scf.if %15 {
      %c0_11 = arith.constant 0 : index
      %c0_12 = arith.constant 0 : index
      %19 = vector.load %arg7[%c0_11, %c0_12] : memref<8x1xf32, #tpu.memory_space<vmem>>, vector<8x1xf32>
      %cst_13 = arith.constant 0.0102040814 : f32
      %20 = vector.broadcast %cst_13 : f32 to vector<8x1xf32>
      %21 = arith.mulf %19, %20 : vector<8x1xf32>
      %c0_14 = arith.constant 0 : index
      %c0_15 = arith.constant 0 : index
      %22 = vector.load %arg8[%c0_14, %c0_15] : memref<8x1xf32, #tpu.memory_space<vmem>>, vector<8x1xf32>
      %cst_16 = arith.constant 0.0102040814 : f32
      %23 = vector.broadcast %cst_16 : f32 to vector<8x1xf32>
      %24 = arith.mulf %22, %23 : vector<8x1xf32>
      %25 = arith.mulf %21, %21 : vector<8x1xf32>
      %26 = arith.subf %24, %25 : vector<8x1xf32>
      %cst_17 = arith.constant 0.000000e+00 : f32
      %27 = vector.broadcast %cst_17 : f32 to vector<8x1xf32>
      %28 = arith.maximumf %26, %27 : vector<8x1xf32>
      %cst_18 = arith.constant 9.99999974E-6 : f32
      %29 = vector.broadcast %cst_18 : f32 to vector<8x1xf32>
      %30 = arith.addf %28, %29 : vector<8x1xf32>
      %31 = math.rsqrt %30 : vector<8x1xf32>
      %c0_19 = arith.constant 0 : index
      %c0_20 = arith.constant 0 : index
      %32 = vector.load %arg4[%c0_19, %c0_20] : memref<8x1xf32, #tpu.memory_space<vmem>>, vector<8x1xf32>
      %33 = arith.mulf %32, %31 : vector<8x1xf32>
      %c0_21 = arith.constant 0 : index
      %c0_22 = arith.constant 0 : index
      %34 = vector.load %arg7[%c0_21, %c0_22] : memref<8x1xf32, #tpu.memory_space<vmem>>, vector<8x1xf32>
      tpu.vector_store %arg7[%c0_21, %c0_22], %33 {strides = array<i32>} : memref<8x1xf32, #tpu.memory_space<vmem>>, vector<8x1xf32>,
      %c0_23 = arith.constant 0 : index
      %c0_24 = arith.constant 0 : index
      %35 = vector.load %arg5[%c0_23, %c0_24] : memref<8x1xf32, #tpu.memory_space<vmem>>, vector<8x1xf32>
      %36 = arith.mulf %21, %33 : vector<8x1xf32>
      %37 = arith.subf %35, %36 : vector<8x1xf32>
      %c0_25 = arith.constant 0 : index
      %c0_26 = arith.constant 0 : index
      %38 = vector.load %arg8[%c0_25, %c0_26] : memref<8x1xf32, #tpu.memory_space<vmem>>, vector<8x1xf32>
      tpu.vector_store %arg8[%c0_25, %c0_26], %37 {strides = array<i32>} : memref<8x1xf32, #tpu.memory_space<vmem>>, vector<8x1xf32>,
    } else {
    }
    %c1_i32_9 = arith.constant 1 : i32
    %16 = arith.cmpi eq, %arg0, %c1_i32_9 : i32
    %17 = arith.extui %16 : i1 to i32
    %c0_i32_10 = arith.constant 0 : i32
    %18 = arith.cmpi ne, %17, %c0_i32_10 : i32
    scf.if %18 {
      %c0_11 = arith.constant 0 : index
      %c0_12 = arith.constant 0 : index
      %19 = vector.load %arg7[%c0_11, %c0_12] : memref<8x1xf32, #tpu.memory_space<vmem>>, vector<8x1xf32>
      %20 = vector.broadcast %19 : vector<8x1xf32> to vector<8x128xf32>
      %21 = arith.mulf %2, %20 : vector<8x128xf32>
      %c0_13 = arith.constant 0 : index
      %c0_14 = arith.constant 0 : index
      %22 = vector.load %arg8[%c0_13, %c0_14] : memref<8x1xf32, #tpu.memory_space<vmem>>, vector<8x1xf32>
      %23 = vector.broadcast %22 : vector<8x1xf32> to vector<8x128xf32>
      %24 = arith.addf %21, %23 : vector<8x128xf32>
      %cst_15 = arith.constant 0.000000e+00 : f32
      %25 = vector.broadcast %cst_15 : f32 to vector<8x128xf32>
      %26 = arith.maximumf %24, %25 : vector<8x128xf32>
      %27 = arith.truncf %26 : vector<8x128xf32> to vector<8x128xbf16>
      %c0_16 = arith.constant 0 : index
      %c0_17 = arith.constant 0 : index
      %28 = vector.load %arg6[%c0_16, %c0_17] : memref<8x128xbf16, #tpu.memory_space<vmem>>, vector<8x128xbf16>
      tpu.vector_store %arg6[%c0_16, %c0_17], %27 {strides = array<i32>} : memref<8x128xbf16, #tpu.memory_space<vmem>>, vector<8x128xbf16>,
    } else {
    }
    return
  }
  func.func @transform_0(%arg0: i32, %arg1: i32) -> (i32, i32) {
    %c0_i32 = arith.constant 0 : i32
    %c0_i32_0 = arith.constant 0 : i32
    return %c0_i32, %arg1 : i32, i32
  }
  func.func @transform_1(%arg0: i32, %arg1: i32) -> (i32, i32) {
    %c0_i32 = arith.constant 0 : i32
    %c0_i32_0 = arith.constant 0 : i32
    %c0_i32_1 = arith.constant 0 : i32
    return %c0_i32, %c0_i32_0 : i32, i32
  }
  func.func @transform_2(%arg0: i32, %arg1: i32) -> (i32, i32) {
    %c0_i32 = arith.constant 0 : i32
    %c0_i32_0 = arith.constant 0 : i32
    %c0_i32_1 = arith.constant 0 : i32
    return %c0_i32, %c0_i32_0 : i32, i32
  }
  func.func @transform_3(%arg0: i32, %arg1: i32) -> (i32, i32) {
    %c0_i32 = arith.constant 0 : i32
    %c0_i32_0 = arith.constant 0 : i32
    %c0_i32_1 = arith.constant 0 : i32
    return %c0_i32, %c0_i32_0 : i32, i32
  }
  func.func @transform_4(%arg0: i32, %arg1: i32) -> (i32, i32) {
    %c0_i32 = arith.constant 0 : i32
    %c0_i32_0 = arith.constant 0 : i32
    return %c0_i32, %arg1 : i32, i32
  }
}

</mosaic_0001>

<bundles_post_ra>
// kernel: tpu_custom_call.1
= control target key start
LH: loop header
LB: loop body
LE: loop exit
PB: predicated region body
PF: predicated region fallthrough
CT: control target
= control target key end

     0   :  { %9 = vsyncpa [#allocation5], 0  ;;  %s700_s0 = inlined_call_operand.hbm [shape: bf16[64,128], index: 0, kind: input, shape index: {}]   ;;  %s701_s1 = inlined_call_operand.vmem [shape: bf16[8,64], index: 1, kind: input, shape index: {}]   ;;  %s702_s2 = inlined_call_operand.vmem [shape: f32[8,1], index: 2, kind: input, shape index: {}]   ;;  %s703_s3 = inlined_call_operand.vmem [shape: f32[8,1], index: 3, kind: input, shape index: {}]   ;;  %s704_s4 = inlined_call_operand.hbm [shape: bf16[8,128], index: 4, kind: output, shape index: {}]  }
   0x1   :  { %10 = vsyncpa [#allocation6], 0  ;;  %s617_s15 = smov 0   ;;  %s619_s16 = smov 0  }
   0x2   :  { %s621_s17 = smov 0  }
   0x3 LB: > { %s410_s18 = sadd.s32 4294967295, %s582_s17   ;;  %s28_s19 = sadd.s32 1, %s578_s16  ;;  %s582_s17 = sphi %s621_s17, %s16_s17   ;;  %s578_s16 = sphi %s619_s16, %s709_s16   ;;  %s574_s15 = sphi %s617_s15, %s708_s15  }
   0x4   : > { %p30_p0 = scmp.ge.s32.totalorder %s28_s19, 2  ;;  %p411_p1 = scmp.ge.s32.totalorder %s582_s17, 1 }
   0x5   : > { %p148_p2 = scmp.lt.s32.totalorder %s582_s17, 3  ;;  %p644_p4 = scmp.eq.s32.totalorder %s410_s18, 0 }
   0x6   : > { %s711_s19 = smov (%p30_p0, %s28_s19), 0  ;;  %s584_s22 = smov [#allocation4]  }
   0x7   : > { %p638_p3 = pnand %p411_p1, %p148_p2  ;;  %s162_s23 = sshll.u32 %s584_s22, 4  ;;  %s163_s23 = int_to_ptr.vmem [resolvable:$true] %s162_s23 }
   0x8   : > { %s513_s24 = scalar_lea.vmem %s163_s23, 512  ;;  %p521_p11 = scmp.lt.s32.totalorder %s163_s23, %s163_s23 }
   0x9   : > { %p455_p5 = pneg %p638_p3  ;;  %p514_p8 = scmp.ne.s32.totalorder %s163_s23, %s513_s24 }
   0xa   : > { %p522_p12 = scmp.lt.s32.totalorder %s513_s24, %s513_s24 }
   0xb   : > { %p456_p6 = pnand %p644_p4, %p455_p5 }
   0xc   : > { %p523_p13 = por %p522_p12, %p521_p11 }
   0xd   : > { %p504_p7 = pneg %p456_p6 }
   0xf   : > { %p516_p9 = pnand %p514_p8, %p504_p7 }
  0x11   : > { %p517_p10 = pneg %p516_p9 }
  0x13   : > { %p524_p0 = pnand %p523_p13, %p517_p10 }
  0x15   : > { %527 = shalt.err (!%p524_p0)
}
  0x16   : > { %s585_s25 = smov 64   ;;  %s586_s26 = smov 4  }
  0x17   : > { %458 = dma.hbm_to_vmem [thread:$0]  (!%p456_p6), %s700_s0, 512, %s163_s23, [#allocation5], %s585_s25, %s585_s25, %s586_s26  }
  0x18   : > { %187 = sbr.rel (%p638_p3) target bundleno = 593 (0x251), region = 36 }
  0x1d   : > { %565 = dma.done.wait (%p644_p4), [#allocation5], 512  }
  0x1e   : > { %567 = vsyncadd (%p644_p4), [#allocation5], 4294966784  ;;  %v587_v0 = vmov 0.0   ;;  %vm588_vm0 = vmmov 0   ;;  %v495_v1 = vld [vmem:[#allocation4 + $0x18] sm:$0xff]   ;;  %v496_v2 = vld [vmem:[#allocation4 + $0x10] sm:$0xff]  }
  0x1f   : > { %435 = vmatprep.subr.bf16.mxu0 %v587_v0  ;;  %443 = vmatprep.mubr.msk.bf16.mxu0 %vm588_vm0, %v587_v0  ;;  %v497_v3 = vld [vmem:[#allocation4 + $0x8] sm:$0xff]   ;;  %v498_v4 = vld [vmem:[#allocation4] sm:$0xff]   ;;  %v204_v5 = vld [vmem:[%s701_s1] sm:$0xf]  ;;  %vm237_vm1 = vcmask 523264   ;;  %p281_p1 = scmp.eq.s32.totalorder %s574_s15, 0 }
  0x20   : > { %436 = vmatpush3.bf16.msra.mxu0 %v495_v1  ;;  %vm287_vm2 = vcmask (%p281_p1), 7168   ;;  %v589_v10 = vmov (%p281_p1), 0.0  }
  0x21   : > { %437 = vmatprep.subr.bf16.mxu0 %v587_v0  ;;  %288 = vst.msk [vmem:[#allocation2] sm:$0xff] (%p281_p1), %vm287_vm2, %v589_v10  ;;  %289 = vst.msk [vmem:[#allocation3] sm:$0xff] (%p281_p1), %vm287_vm2, %v589_v10 }
  0x24   : > { %438 = vmatpush3.bf16.msra.mxu0 %v496_v2 }
  0x25   : > { %439 = vmatprep.subr.bf16.mxu0 %v587_v0 }
  0x28   : > { %440 = vmatpush3.bf16.msra.mxu0 %v497_v3 }
  0x29   : > { %441 = vmatprep.subr.bf16.mxu0 %v587_v0 }
  0x2c   : > { %442 = vmatpush3.bf16.msra.mxu0 %v498_v4 }
  0x2f   : > { %444 = vmatmul.mubr.msk.bf16.vlgmr.msra.gmra.mxu0 %vm237_vm1, %v204_v5 }
  0xef   : > { %v275_v6 = vpop.f32.mrf.mxu0 }
  0xf1   : > { %v445_v7 = vpop.f32.mrf.mxu0  ;;  %286 = sbr.rel (!%p281_p1) target bundleno = 246 (0xf6), region = 44 }
  0xf3   : > { %v278_v8 = vpop.f32.mrf.mxu0 }
  0xf5   : > { %v446_v9 = vpop.f32.mrf.mxu0 }
  0xf6 PF: > { %p421_p2 = scmp.ne.s32.totalorder %s574_s15, 0 }
  0xf8   : > { %292 = sbr.rel (%p421_p2) target bundleno = 398 (0x18e), region = 48 }
  0xfd   : > { %294 = vadd.xlane.f32.xlu0 %v275_v6  ;;  %v300_v11 = vmul.f32 %v275_v6, %v275_v6  ;;  %v305_v12 = vpack.c.bf16 %v275_v6, %v275_v6  ;;  %v293_v13 = vld [vmem:[#allocation2] sm:$0xff]  ;;  %vm297_vm3 = vcmask 7168   ;;  %v299_v16 = vld [vmem:[#allocation3] sm:$0xff] }
  0xff   : > { %306 = vst [vmem:[#allocation7] sm:$0xf] %v305_v12 }
 0x101   : > { %301 = vadd.xlane.f32.xlu0 %v300_v11 }
 0x186   : > { %v295_v14 = vpop.xlane.xlu0 %294 }
 0x187   : > { %v296_v15 = vadd.f32 %v295_v14, %v293_v13 }
 0x189   : > { %298 = vst.msk [vmem:[#allocation2] sm:$0xff] %vm297_vm3, %v296_v15 }
 0x18a   : > { %v302_v17 = vpop.xlane.xlu0 %301 }
 0x18b   : > { %v303_v18 = vadd.f32 %v302_v17, %v299_v16 }
 0x18d   : > { %304 = vst.msk [vmem:[#allocation3] sm:$0xff] %vm297_vm3, %v303_v18 }
 0x18e PF: > { %p307_p3 = scmp.eq.s32.totalorder %s574_s15, 1 }
 0x18f   : > { %v321_v27 = vld [vmem:[%s702_s2] sm:$0xff] (%p307_p3)  ;;  %vm323_vm4 = vcmask (%p307_p3), 7168  }
 0x190   : > { %311 = sbr.rel (!%p307_p3) target bundleno = 434 (0x1b2), region = 52  ;;  %v312_v19 = vld [vmem:[#allocation2] sm:$0xff] (%p307_p3) }
 0x191   : > { %v313_v21 = vmul.f32 (%p307_p3), 0.010204081, %v312_v19  ;;  %v325_v30 = vld [vmem:[%s703_s3] sm:$0xff] (%p307_p3) }
 0x193   : > { %v316_v23 = vmul.f32 (%p307_p3), %v313_v21, %v313_v21 }
 0x194   : > { %v314_v20 = vld [vmem:[#allocation3] sm:$0xff] (%p307_p3) }
 0x195   : > { %v315_v22 = vmul.f32 0.010204081, %v314_v20 }
 0x197   : > { %v317_v24 = vsub.f32 %v315_v22, %v316_v23 }
 0x199   : > { %v318_v25 = vmax.f32 %v317_v24, 0.0 }
 0x19b   : > { %v319_v26 = vadd.f32 1e-05, %v318_v25 }
 0x19d   : > { %499 = vrsqrt.f32 %v319_v26 }
 0x1aa   : > { %v500_v28 = vpop.eup %499 }
 0x1ab   : > { %v322_v29 = vmul.f32 %v500_v28, %v321_v27 }
 0x1ad   : > { %324 = vst.msk [vmem:[#allocation2] sm:$0xff] %vm323_vm4, %v322_v29  ;;  %v326_v31 = vmul.f32 %v322_v29, %v313_v21 }
 0x1af   : > { %v327_v32 = vsub.f32 %v325_v30, %v326_v31 }
 0x1b1   : > { %328 = vst.msk [vmem:[#allocation3] sm:$0xff] %vm323_vm4, %v327_v32 }
 0x1b2 PF: > { %p423_p4 = scmp.ne.s32.totalorder %s574_s15, 1 }
 0x1b4   : > { %331 = sbr.rel (%p423_p4) target bundleno = 578 (0x242), region = 56 }
 0x1b9   : > { %v332_v33 = vld [vmem:[#allocation2] sm:$0xff]  ;;  %v590_v34 = vmov 0   ;;  %v339_v35 = vld [vmem:[#allocation3] sm:$0xff] }
 0x1ba   : > { %501 = vset.pattern.permute.xlu0 %v590_v34 }
 0x1bb   : > { %335 = vperm.xlu0 %501, %v332_v33  }
 0x1bf   : > { %342 = vperm.xlu0 %501, %v339_v35  }
 0x236   : > { %v336_v36 = vpop.permute.xlu0 %335 }
 0x237   : > { %v338_v37 = vmul.f32 %v336_v36, %v275_v6 }
 0x23a   : > { %v343_v38 = vpop.permute.xlu0 %342 }
 0x23b   : > { %v345_v39 = vadd.f32 %v343_v38, %v338_v37 }
 0x23d   : > { %v346_v40 = vmax.f32 %v345_v39, 0.0 }
 0x23f   : > { %v347_v41 = vpack.c.bf16 %v346_v40, %v346_v40 }
 0x241   : > { %348 = vst [vmem:[#allocation7] sm:$0xf] %v347_v41 }
 0x242 PF: > { %p676_p5 = scmp.eq.s32.totalorder %s410_s18, 1  ;;  %s591_s10 = smov [#allocation7]  }
 0x243   : > { %s358_s11 = sshll.u32 %s591_s10, 4  ;;  %s359_s11 = int_to_ptr.vmem [resolvable:$true] %s358_s11 }
 0x244   : > { %s528_s12 = scalar_lea.vmem %s359_s11, 64  ;;  %p535_p9 = scmp.lt.s32.totalorder %s359_s11, %s359_s11 }
 0x245   : > { %p529_p6 = scmp.ne.s32.totalorder %s359_s11, %s528_s12  ;;  %p536_p10 = scmp.lt.s32.totalorder %s528_s12, %s528_s12 }
 0x247   : > { %p530_p7 = pnand %p529_p6, %p676_p5  ;;  %p537_p11 = por %p536_p10, %p535_p9 }
 0x249   : > { %p531_p8 = pneg %p530_p7 }
 0x24b   : > { %p538_p12 = pnand %p537_p11, %p531_p8 }
 0x24d   : > { %541 = shalt.err (!%p538_p12)
}
 0x24e   : > { %452 = dma.vmem_to_hbm [thread:$0]  (%p676_p5), %s359_s11, 64, %s704_s4, [#allocation6]  }
 0x24f   : > { %569 = dma.done.wait (%p676_p5), [#allocation6], 64  }
 0x250   : > { %571 = vsyncadd (%p676_p5), [#allocation6], 4294967232 }
 0x251 PF: > { %s16_s17 = sadd.s32 1, %s582_s17   ;;  %s708_s15 = smov %s578_s16 }
 0x252   : > { %p13_p13 = scmp.ge.s32.totalorder %s16_s17, 4   ;;  %s709_s16 = smov %s711_s19 }
 0x254   :  { %15 = sbr.rel (!%p13_p13) target bundleno = 3 (0x3), region = 83 }
 0x259   :  { %371 = vsyncpa [#allocation5], 1 }
 0x25a   :  { %373 = vsyncpa [#allocation5 + $0x1], 1 }
 0x25b   :  { %374 = vsyncpa [#allocation6], 1 }
 0x25c   :  { %376 = vsyncpa [#allocation6 + $0x1], 1 }

</bundles_post_ra>
